<compile_context>
chip_gen: v5e
topology: v5e:2x2
jax: 0.10.0
libtpu: 0.0.40
codegen_flags: <defaults>
</compile_context>

<pallas_src>
import functools

import jax
import jax.numpy as jnp
from jax.experimental import pallas as pl
from jax.experimental.pallas import tpu as pltpu

_MIB = 1024 * 1024


def _gelu(h, approx):
    if approx:
        # tanh form routes the transcendental to the (otherwise idle) EUP slot.
        return jax.nn.gelu(h, approximate=True)
    # exact erf variant (matches nn.GELU default)
    return 0.5 * h * (1.0 + jax.lax.erf(h * 0.7071067811865476))


def _mlp_kernel(x_ref, w1_ref, c1_ref, w2_ref, c2_ref, o_ref, acc_ref=None,
                *, approx_gelu, n_k):
    # x_ref:  [C_in,  TS]     spatial tile (lane axis = spatial positions)
    # w1_ref: [TK,    C_in]   fc1 weight block, BN1 scale folded in (bf16)
    # c1_ref: [TK,    1]      fused fc1 bias + BN1 shift (f32)
    # w2_ref: [C_out, TK]     fc2 weight block, BN2 scale folded in (bf16)
    # c2_ref: [C_out, 1]      fused fc2 bias + BN2 shift (f32)
    # o_ref:  [C_out, TS]
    # acc_ref:[C_out, TS] f32 scratch (only present when n_k > 1)
    x = x_ref[...].astype(w1_ref.dtype)            # bf16 MXU operand

    # fc1 (+ folded BN1) on this hidden block: [TK, TS], f32 accumulation
    h = jnp.dot(w1_ref[...], x, preferred_element_type=jnp.float32) + c1_ref[...]
    h = _gelu(h, approx_gelu)

    # fc2 partial product over this hidden block: [C_out, TS]
    y = jnp.dot(w2_ref[...], h.astype(w2_ref.dtype),
                preferred_element_type=jnp.float32)

    if n_k == 1:
        o_ref[...] = (y + c2_ref[...]).astype(o_ref.dtype)
    else:
        k = pl.program_id(2)

        @pl.when(k == 0)
        def _():
            acc_ref[...] = jnp.zeros_like(acc_ref)

        acc_ref[...] += y

        @pl.when(k == n_k - 1)
        def _():
            o_ref[...] = (acc_ref[...] + c2_ref[...]).astype(o_ref.dtype)


def _fold_bn(gamma, beta, mean, var, eps):
    scale = gamma / jnp.sqrt(var + eps)
    shift = beta - mean * scale
    return scale, shift


def _device_vmem_bytes():
    # v5e/v6e: 128 MiB per TensorCore, v7x: 64 MiB. Conservative fallback.
    try:
        info = pltpu.get_tpu_info()
        cap = getattr(info, "vmem_capacity_bytes", None)
        if cap:
            return int(cap)
    except Exception:
        pass
    return 64 * _MIB


def _spec(shape, index_map, buffers=None):
    """BlockSpec with optional explicit buffer count (graceful fallback)."""
    if buffers is None:
        return pl.BlockSpec(shape, index_map)
    try:
        return pl.BlockSpec(shape, index_map, pipeline_mode=pl.Buffered(buffers))
    except (TypeError, AttributeError):
        return pl.BlockSpec(shape, index_map)


@functools.partial(jax.jit,
                   static_argnames=("compute_dtype", "approx_gelu", "max_tile_s"))
def mlp_forward(x_nchw, params, compute_dtype=jnp.bfloat16, approx_gelu=False,
                max_tile_s=4096, eps=1e-5):
    """Mlp forward. x_nchw: [B, C_in, H, W] -> [B, C_out, H, W] (same dtype)."""
    B, C_in, H, W = x_nchw.shape
    w1 = params["w1"]            # [C_hid, C_in]  (Conv2d 1x1 weight, squeezed)
    w2 = params["w2"]            # [C_out, C_hid]
    C_hid, C_out = w1.shape[0], w2.shape[0]

    s1, t1 = _fold_bn(params["bn1_gamma"], params["bn1_beta"],
                      params["bn1_mean"], params["bn1_var"], eps)
    s2, t2 = _fold_bn(params["bn2_gamma"], params["bn2_beta"],
                      params["bn2_mean"], params["bn2_var"], eps)

    # Fold BN scale into the weights in f32; cast only the final weight to bf16.
    w1f = (w1.astype(jnp.float32) * s1[:, None]).astype(compute_dtype)
    c1 = (params["b1"] * s1 + t1).astype(jnp.float32).reshape(C_hid, 1)
    w2f = (w2.astype(jnp.float32) * s2[:, None]).astype(compute_dtype)
    c2 = (params["b2"] * s2 + t2).astype(jnp.float32).reshape(C_out, 1)

    n_sp = H * W
    x_t = x_nchw.reshape(B, C_in, n_sp)      # contiguous view, no pad / transpose

    in_b = x_nchw.dtype.itemsize             # output dtype == input dtype
    cd_b = jnp.dtype(compute_dtype).itemsize

    vmem_cap = _device_vmem_bytes()
    budget = max(16 * _MIB, int(0.6 * (vmem_cap - 8 * _MIB)))

    def est_vmem(ts, tk, x_buf=2):
        nk = C_hid // tk
        w_buf = 1 if nk == 1 else 2
        return (x_buf * ts * C_in * in_b                   # x tiles (streamed)
                + 2 * ts * C_out * in_b                    # out tiles (streamed)
                + w_buf * (tk * C_in + C_out * tk) * cd_b  # weight blocks
                + w_buf * tk * 128 * 4                     # c1 (lane-padded)
                + C_out * 128 * 4                          # c2 (single-buffered)
                + (ts * C_out * 4 if nk > 1 else 0)        # f32 accumulator
                + 3 * tk * ts * 4)                         # f32 hidden temporaries

    # Hidden-block candidates: full C_hid preferred (no reduction axis),
    # otherwise a 128-multiple divisor (edge padding of the reduction axis
    # would corrupt the sum, so the block must divide C_hid exactly).
    tk_candidates = [C_hid]
    for cand in (1024, 512, 256, 128):
        if cand < C_hid and C_hid % cand == 0:
            tk_candidates.append(cand)

    # Spatial-tile candidates: largest lane-dense tile first (per-step overhead
    # ~0.35 us dominates small tiles); edge block is masked so it need not divide.
    ts_candidates = [n_sp] if n_sp <= max_tile_s else []
    for cand in (4096, 2048, 1024, 512, 256, 128):
        if cand <= max_tile_s and cand < n_sp:
            ts_candidates.append(cand)
    if not ts_candidates:
        ts_candidates = [min(n_sp, max_tile_s)]

    ts_floor = min(512, n_sp)
    ts = tk = None
    for allow_small_ts in (False, True):
        for cand_ts in ts_candidates:
            if not allow_small_ts and cand_ts < ts_floor:
                continue
            for cand_tk in tk_candidates:
                if est_vmem(cand_ts, cand_tk) <= budget:
                    ts, tk = cand_ts, cand_tk
                    break
            if ts is not None:
                break
        if ts is not None:
            break
    if ts is None:                       # extreme fallback: smallest tiles
        ts, tk = ts_candidates[-1], tk_candidates[-1]

    n_k = C_hid // tk
    grid = (B, pl.cdiv(n_sp, ts), n_k)

    # Deeper input pipelining only on large-VMEM parts (v5e/v6e) with slack.
    x_buffers = None
    if vmem_cap >= 96 * _MIB and est_vmem(ts, tk, x_buf=3) <= budget:
        x_buffers = 3
    # Grid-invariant operands are single-buffered (never re-fetched).
    w_buffers = 1 if n_k == 1 else None

    est = est_vmem(ts, tk, x_buf=(x_buffers or 2))
    vmem_limit = int(min(vmem_cap - 8 * _MIB, max(32 * _MIB, int(1.25 * est))))

    kernel = functools.partial(_mlp_kernel, approx_gelu=approx_gelu, n_k=n_k)
    scratch_shapes = [pltpu.VMEM((C_out, ts), jnp.float32)] if n_k > 1 else []

    cost = pl.CostEstimate(
        flops=2 * B * n_sp * C_hid * (C_in + C_out),
        transcendentals=B * n_sp * C_hid,
        bytes_accessed=(B * n_sp * (C_in + C_out) * in_b
                        + (C_hid * C_in + C_out * C_hid) * cd_b
                        + (C_hid + C_out) * 4),
    )

    out = pl.pallas_call(
        kernel,
        out_shape=jax.ShapeDtypeStruct((B, C_out, n_sp), x_nchw.dtype),
        grid_spec=pltpu.PrefetchScalarGridSpec(
            num_scalar_prefetch=0,
            grid=grid,
            in_specs=[
                _spec((None, C_in, ts), lambda b, s, k: (b, 0, s), x_buffers),
                _spec((tk, C_in), lambda b, s, k: (k, 0), w_buffers),
                _spec((tk, 1), lambda b, s, k: (k, 0), w_buffers),
                _spec((C_out, tk), lambda b, s, k: (0, k), w_buffers),
                _spec((C_out, 1), lambda b, s, k: (0, 0), 1),
            ],
            out_specs=pl.BlockSpec((None, C_out, ts), lambda b, s, k: (b, 0, s)),
            scratch_shapes=scratch_shapes,
        ),
        compiler_params=pltpu.CompilerParams(
            dimension_semantics=("parallel", "parallel", "arbitrary"),
            vmem_limit_bytes=vmem_limit),
        cost_estimate=cost,
    )(x_t, w1f, c1, w2f, c2)

    return out.reshape(B, C_out, H, W)


def _reference(x_nchw, params, eps=1e-5):
    """Pure-JAX f32 reference mirroring the PyTorch forward (eval mode)."""
    s1, t1 = _fold_bn(params["bn1_gamma"], params["bn1_beta"],
                      params["bn1_mean"], params["bn1_var"], eps)
    s2, t2 = _fold_bn(params["bn2_gamma"], params["bn2_beta"],
                      params["bn2_mean"], params["bn2_var"], eps)
    x = x_nchw.astype(jnp.float32)
    h = jnp.einsum("bchw,dc->bdhw", x, params["w1"]) + params["b1"][None, :, None, None]
    h = h * s1[None, :, None, None] + t1[None, :, None, None]
    h = 0.5 * h * (1.0 + jax.lax.erf(h / jnp.sqrt(2.0)))
    y = jnp.einsum("bdhw,ed->behw", h, params["w2"]) + params["b2"][None, :, None, None]
    y = y * s2[None, :, None, None] + t2[None, :, None, None]
    return y.astype(x_nchw.dtype)


def make_params(key, in_features, hidden_features, out_features):
    ks = jax.random.split(key, 8)
    std = 0.02
    # trunc_normal_(std=0.02): approximated with a clipped normal (deterministic).
    tn = lambda k, shp: jnp.clip(jax.random.normal(k, shp) * std, -2 * std, 2 * std)
    params = {
        # Conv2d 1x1 weight [C_out, C_in, 1, 1] stored squeezed as [C_out, C_in].
        "w1": tn(ks[0], (hidden_features, in_features)).astype(jnp.float32),
        "b1": jnp.zeros((hidden_features,), jnp.float32),     # bias init = 0
        "w2": tn(ks[1], (out_features, hidden_features)).astype(jnp.float32),
        "b2": jnp.zeros((out_features,), jnp.float32),
        # BatchNorm params / running stats (synthetic, deterministic, nontrivial)
        "bn1_gamma": 1.0 + 0.1 * jax.random.normal(ks[2], (hidden_features,)),
        "bn1_beta": 0.05 * jax.random.normal(ks[3], (hidden_features,)),
        "bn1_mean": 0.1 * jax.random.normal(ks[4], (hidden_features,)),
        "bn1_var": jnp.abs(1.0 + 0.1 * jax.random.normal(ks[5], (hidden_features,))),
        "bn2_gamma": 1.0 + 0.1 * jax.random.normal(ks[6], (out_features,)),
        "bn2_beta": 0.05 * jax.random.normal(ks[7], (out_features,)),
        "bn2_mean": jnp.zeros((out_features,), jnp.float32),
        "bn2_var": jnp.ones((out_features,), jnp.float32),
    }
    return params


if __name__ == "__main__":
    key = jax.random.PRNGKey(0)
    k_x, k_p = jax.random.split(key)

    B, C_in, H, W = 2, 4, 16, 16
    hidden, C_out = 32, 4

    x = jax.random.normal(k_x, (B, C_in, H, W), dtype=jnp.float32)
    params = make_params(k_p, C_in, hidden, C_out)

    out = jax.block_until_ready(mlp_forward(x, params))
    ref = _reference(x, params)
    assert out.shape == (B, C_out, H, W), out.shape
    # bf16 MXU operands -> tolerance looser than a pure-f32 check.
    assert jnp.allclose(out, ref, atol=2e-2, rtol=2e-2), "mismatch vs JAX reference"

    # bf16 I/O path (surrounding bf16 model): same kernel, half the HBM traffic.
    out_bf16 = jax.block_until_ready(mlp_forward(x.astype(jnp.bfloat16), params))
    assert out_bf16.dtype == jnp.bfloat16 and out_bf16.shape == (B, C_out, H, W)

    print("KERNEL_OK")
</pallas_src>

<mosaic_0001>
module attributes {stable_mosaic.version = 11 : i64} {
  func.func @_mlp_kernel(%arg0: i32, %arg1: i32, %arg2: i32, %arg3: memref<1x4x256xf32, #tpu.memory_space<vmem>>, %arg4: memref<32x4xbf16, #tpu.memory_space<vmem>>, %arg5: memref<32x1xf32, #tpu.memory_space<vmem>>, %arg6: memref<4x32xbf16, #tpu.memory_space<vmem>>, %arg7: memref<4x1xf32, #tpu.memory_space<vmem>>, %arg8: memref<1x4x256xf32, #tpu.memory_space<vmem>>) attributes {dimension_semantics = [#tpu.dimension_semantics<parallel>, #tpu.dimension_semantics<parallel>, #tpu.dimension_semantics<arbitrary>], iteration_bounds = array<i64: 2, 1, 1>, scalar_prefetch = 0 : i64, scratch_operands = 0 : i64, tpu.core_type = #tpu.core_type<tc>, window_params = [{transform_indices = @transform_0, window_bounds = array<i64: 1, 4, 256>}, {pipeline_mode = #tpu.pipeline_mode<synchronous>, transform_indices = @transform_1, window_bounds = array<i64: 32, 4>}, {pipeline_mode = #tpu.pipeline_mode<synchronous>, transform_indices = @transform_2, window_bounds = array<i64: 32, 1>}, {pipeline_mode = #tpu.pipeline_mode<synchronous>, transform_indices = @transform_3, window_bounds = array<i64: 4, 32>}, {pipeline_mode = #tpu.pipeline_mode<synchronous>, transform_indices = @transform_4, window_bounds = array<i64: 4, 1>}, {transform_indices = @transform_5, window_bounds = array<i64: 1, 4, 256>}]} {
    %c0 = arith.constant 0 : index
    %c0_0 = arith.constant 0 : index
    %c0_1 = arith.constant 0 : index
    %0 = vector.load %arg3[%c0, %c0_0, %c0_1] : memref<1x4x256xf32, #tpu.memory_space<vmem>>, vector<1x4x256xf32>
    %1 = vector.shape_cast %0 : vector<1x4x256xf32> to vector<4x256xf32>
    %2 = arith.truncf %1 : vector<4x256xf32> to vector<4x256xbf16>
    %c0_2 = arith.constant 0 : index
    %c0_3 = arith.constant 0 : index
    %3 = vector.load %arg4[%c0_2, %c0_3] : memref<32x4xbf16, #tpu.memory_space<vmem>>, vector<32x4xbf16>
    %cst = arith.constant dense<0.000000e+00> : vector<32x256xf32>
    %4 = tpu.matmul %3, %2, %cst {dimension_numbers = #tpu.dot_dimension_numbers<[1], [0], [0], [1], [0, 0, 1, 1], [], []>} : vector<32x4xbf16>, vector<4x256xbf16>, vector<32x256xf32> -> vector<32x256xf32>
    %c0_4 = arith.constant 0 : index
    %c0_5 = arith.constant 0 : index
    %5 = vector.load %arg5[%c0_4, %c0_5] : memref<32x1xf32, #tpu.memory_space<vmem>>, vector<32x1xf32>
    %6 = vector.broadcast %5 : vector<32x1xf32> to vector<32x256xf32>
    %7 = arith.addf %4, %6 : vector<32x256xf32>
    %cst_6 = arith.constant 5.000000e-01 : f32
    %8 = vector.broadcast %cst_6 : f32 to vector<32x256xf32>
    %9 = arith.mulf %8, %7 : vector<32x256xf32>
    %cst_7 = arith.constant 0.707106769 : f32
    %10 = vector.broadcast %cst_7 : f32 to vector<32x256xf32>
    %11 = arith.mulf %7, %10 : vector<32x256xf32>
    %12 = math.erf %11 : vector<32x256xf32>
    %cst_8 = arith.constant 1.000000e+00 : f32
    %13 = vector.broadcast %cst_8 : f32 to vector<32x256xf32>
    %14 = arith.addf %13, %12 : vector<32x256xf32>
    %15 = arith.mulf %9, %14 : vector<32x256xf32>
    %c0_9 = arith.constant 0 : index
    %c0_10 = arith.constant 0 : index
    %16 = vector.load %arg6[%c0_9, %c0_10] : memref<4x32xbf16, #tpu.memory_space<vmem>>, vector<4x32xbf16>
    %17 = arith.truncf %15 : vector<32x256xf32> to vector<32x256xbf16>
    %cst_11 = arith.constant dense<0.000000e+00> : vector<4x256xf32>
    %18 = tpu.matmul %16, %17, %cst_11 {dimension_numbers = #tpu.dot_dimension_numbers<[1], [0], [0], [1], [0, 0, 1, 1], [], []>} : vector<4x32xbf16>, vector<32x256xbf16>, vector<4x256xf32> -> vector<4x256xf32>
    %c0_12 = arith.constant 0 : index
    %c0_13 = arith.constant 0 : index
    %19 = vector.load %arg7[%c0_12, %c0_13] : memref<4x1xf32, #tpu.memory_space<vmem>>, vector<4x1xf32>
    %20 = vector.broadcast %19 : vector<4x1xf32> to vector<4x256xf32>
    %21 = arith.addf %18, %20 : vector<4x256xf32>
    %c0_14 = arith.constant 0 : index
    %c0_15 = arith.constant 0 : index
    %c0_16 = arith.constant 0 : index
    %22 = vector.load %arg8[%c0_14, %c0_15, %c0_16] : memref<1x4x256xf32, #tpu.memory_space<vmem>>, vector<1x4x256xf32>
    %23 = vector.shape_cast %22 : vector<1x4x256xf32> to vector<4x256xf32>
    %24 = vector.shape_cast %21 : vector<4x256xf32> to vector<1x4x256xf32>
    tpu.vector_store %arg8[%c0_14, %c0_15, %c0_16], %24 {strides = array<i32>} : memref<1x4x256xf32, #tpu.memory_space<vmem>>, vector<1x4x256xf32>,
    return
  }
  func.func @transform_0(%arg0: i32, %arg1: i32, %arg2: i32) -> (i32, i32, i32) {
    %c0_i32 = arith.constant 0 : i32
    %c0_i32_0 = arith.constant 0 : i32
    return %arg0, %c0_i32, %arg1 : i32, i32, i32
  }
  func.func @transform_1(%arg0: i32, %arg1: i32, %arg2: i32) -> (i32, i32) {
    %c0_i32 = arith.constant 0 : i32
    %c0_i32_0 = arith.constant 0 : i32
    return %arg2, %c0_i32 : i32, i32
  }
  func.func @transform_2(%arg0: i32, %arg1: i32, %arg2: i32) -> (i32, i32) {
    %c0_i32 = arith.constant 0 : i32
    %c0_i32_0 = arith.constant 0 : i32
    return %arg2, %c0_i32 : i32, i32
  }
  func.func @transform_3(%arg0: i32, %arg1: i32, %arg2: i32) -> (i32, i32) {
    %c0_i32 = arith.constant 0 : i32
    %c0_i32_0 = arith.constant 0 : i32
    return %c0_i32, %arg2 : i32, i32
  }
  func.func @transform_4(%arg0: i32, %arg1: i32, %arg2: i32) -> (i32, i32) {
    %c0_i32 = arith.constant 0 : i32
    %c0_i32_0 = arith.constant 0 : i32
    %c0_i32_1 = arith.constant 0 : i32
    return %c0_i32, %c0_i32_0 : i32, i32
  }
  func.func @transform_5(%arg0: i32, %arg1: i32, %arg2: i32) -> (i32, i32, i32) {
    %c0_i32 = arith.constant 0 : i32
    %c0_i32_0 = arith.constant 0 : i32
    return %arg0, %c0_i32, %arg1 : i32, i32, i32
  }
}

</mosaic_0001>

<bundles_post_ra>
// kernel: mlp_forward.1
= control target key start
LH: loop header
LB: loop body
LE: loop exit
PB: predicated region body
PF: predicated region fallthrough
CT: control target
= control target key end

     0   :  { %s1106_s18 = smov 0   ;;  %s1108_s19 = smov 0   ;;  %s1447_s0 = inlined_call_operand.vmem [shape: f32[2,4,256], index: 0, kind: input, shape index: {}]   ;;  %s1448_s1 = inlined_call_operand.vmem [shape: bf16[32,4], index: 1, kind: input, shape index: {}]   ;;  %s1449_s2 = inlined_call_operand.vmem [shape: f32[32,1], index: 2, kind: input, shape index: {}]   ;;  %s1450_s3 = inlined_call_operand.vmem [shape: bf16[4,32], index: 3, kind: input, shape index: {}]   ;;  %s1451_s4 = inlined_call_operand.vmem [shape: f32[4,1], index: 4, kind: input, shape index: {}]   ;;  %s1452_s5 = inlined_call_operand.vmem [shape: f32[2,4,256], index: 5, kind: output, shape index: {}]  }
   0x1   :  { %s1110_s20 = smov 0  }
   0x2 LB: > { %s34_s21 = sadd.s32 1, %s1069_s19  ;;  %p974_p0 = scmp.ge.s32.totalorder %s1073_s20, 1  ;;  %s1073_s20 = sphi %s1110_s20, %s15_s20   ;;  %s1069_s19 = sphi %s1108_s19, %s1462_s19   ;;  %s1065_s18 = sphi %s1106_s18, %s1461_s18  }
   0x3   : > { %p36_p1 = scmp.ge.s32.totalorder %s34_s21, 2  ;;  %p246_p2 = scmp.lt.s32.totalorder %s1073_s20, 3 }
   0x5   : > { %s1464_s21 = smov (%p36_p1, %s34_s21), 0  ;;  %p247_p3 = pnand %p974_p0, %p246_p2 }
   0x6   : > { %p297_p4 = scmp.lt.s32.totalorder (!%p247_p3), %s1065_s18, 1 }
   0x7   : > { %250 = sbr.rel (%p247_p3) target bundleno = 415 (0x19f), region = 40 }
   0xc   : > { %v346_v0 = vld [vmem:[%s1449_s2] sm:$0xff]  ;;  %v1075_v1 = vmov 0   ;;  %s1466_s18 = smov (!%p297_p4, %s1065_s18), 1  ;;  %v348_v2 = vld [vmem:[%s1449_s2 + $0x10] sm:$0xff]  ;;  %v347_v4 = vld [vmem:[%s1449_s2 + $0x8] sm:$0xff]  ;;  %vm387_vm0 = vcmask 1041408  }
   0xd   : > { %1033 = vset.pattern.permute.xlu1 %v1075_v1  ;;  %1032 = vset.pattern.permute.xlu0 %v1075_v1  ;;  %s1003_s24 = sshll.u32 %s1466_s18, 3  ;;  %v349_v5 = vld [vmem:[%s1449_s2 + $0x18] sm:$0xff]  ;;  %v1005_v12 = vld [vmem:[%s1448_s1] sm:$0xff]  ;;  %vm380_vm1 = vcmask 31744   ;;  %v1006_v13 = vld [vmem:[%s1448_s1 + $0x8] sm:$0xff] }
   0xe   : > { %352 = vperm.xlu1 %1033, %v346_v0   ;;  %1034 = vset.pattern.permute.xlu2 %v1075_v1  ;;  %s304_s27 = scalar_lea.vmem %s1447_s0, %s1003_s24  ;;  %s330_s23 = scalar_lea.vmem %s1452_s5, %s1003_s24 }
   0xf   : > { %v333_v3 = vld [vmem:[%s304_s27] sm:$0xff]  ;;  %362 = vperm.xlu0 %1032, %v348_v2  }
  0x10   : > { %335 = vst [vmem:[#allocation1] ss:$2 sm:$0xff] %v333_v3 }
  0x16   : > { %357 = vperm.xlu1 %1033, %v347_v4  }
  0x17   : > { %v336_v6 = vld.sshfl [vmem:[#allocation1] sm:$0xff pattern:$0x75316420]  ;;  %v337_v7 = vld.sshfl [vmem:[#allocation1 + $0x8] sm:$0xff pattern:$0x75316420]  ;;  %367 = vperm.xlu0 %1032, %v349_v5  }
  0x18   : > { %v340_v8 = vpack.c.bf16 %v336_v6, %v336_v6  ;;  %v341_v9 = vpack.c.bf16 %v337_v7, %v337_v7 }
  0x1a   : > { %v389_v10 = vsel %vm387_vm0, %v340_v8, 0  ;;  %v392_v11 = vsel %vm387_vm0, %v341_v9, 0 }
  0x1b   : > { %401 = vmatpush.bf16.msra.mxu0 %v389_v10  ;;  %420 = vmatpush.bf16.msra.mxu1 %v392_v11 }
  0x1e   : > { %987 = vmatmul.msk.bf16.vlgmr.msra.gmra.mxu0 %vm380_vm1, %v1005_v12  ;;  %989 = vmatmul.msk.bf16.vlgmr.msra.gmra.mxu1 %vm380_vm1, %v1005_v12 }
  0x2e   : > { %988 = vmatmul.msk.bf16.gmra.mxu0 %vm380_vm1, %v1006_v13  ;;  %990 = vmatmul.msk.bf16.gmra.mxu1 %vm380_vm1, %v1006_v13 }
  0x80   : > { %v353_v14 = vpop.permute.xlu1 %352 }
  0x81   : > { %v363_v32 = vpop.permute.xlu0 %362 }
  0x88   : > { %v358_v27 = vpop.permute.xlu1 %357 }
  0x89   : > { %v368_v56 = vpop.permute.xlu0 %367 }
  0x9b   : > { %v403_v15 = vpop.f32.mrf.mxu0  ;;  %v422_v16 = vpop.f32.mrf.mxu1 }
  0x9c   : > { %v1150_v17 = vadd.f32 %v403_v15, %v353_v14  ;;  %v1152_v18 = vadd.f32 %v422_v16, %v353_v14 }
  0x9e   : > { %v1155_v19 = vmul.f32 0.70710677, %v1150_v17  ;;  %v1158_v20 = vmul.f32 0.70710677, %v1152_v18 }
  0xa0   : > { %v448_v21 = vmul.f32 %v1155_v19, %v1155_v19  ;;  %v488_v22 = vmul.f32 %v1158_v20, %v1158_v20 }
  0xa2   : > { %v1164_v23 = vmin.f32 %v448_v21, 16.0  ;;  %v1166_v26 = vmin.f32 %v488_v22, 16.0 }
  0xa3   : > { %v405_v24 = vpop.f32.mrf.mxu0  ;;  %v424_v25 = vpop.f32.mrf.mxu1 }
  0xa4   : > { %v450_v28 = vmul.f32 2.1237322e-06, %v1164_v23  ;;  %v1169_v29 = vadd.f32 %v405_v24, %v358_v27  ;;  %v1171_v30 = vadd.f32 %v424_v25, %v358_v27  ;;  %v490_v31 = vmul.f32 2.1237322e-06, %v1166_v26 }
  0xa5   : > { %v461_v36 = vmul.f32 3.8918573e-05, %v1164_v23 }
  0xa6   : > { %v451_v33 = vadd.f32 0.00028619796, %v450_v28  ;;  %v1180_v39 = vmul.f32 0.70710677, %v1169_v29  ;;  %v1183_v40 = vmul.f32 0.70710677, %v1171_v30 }
  0xa7   : > { %v491_v41 = vadd.f32 0.00028619796, %v490_v31  ;;  %v462_v44 = vadd.f32 0.001143296, %v461_v36 }
  0xa8   : > { %v452_v42 = vmul.f32 %v451_v33, %v1164_v23  ;;  %v528_v46 = vmul.f32 %v1180_v39, %v1180_v39  ;;  %v568_v47 = vmul.f32 %v1183_v40, %v1183_v40 }
  0xa9   : > { %v492_v49 = vmul.f32 %v491_v41, %v1166_v26  ;;  %v463_v55 = vmul.f32 %v462_v44, %v1164_v23 }
  0xaa   : > { %v453_v51 = vadd.f32 0.0036580483, %v452_v42  ;;  %v1206_v58 = vmin.f32 %v528_v46, 16.0  ;;  %v1208_v59 = vmin.f32 %v568_v47, 16.0 }
  0xab   : > { %v408_v34 = vpop.f32.mrf.mxu0  ;;  %v427_v35 = vpop.f32.mrf.mxu1  ;;  %v493_v62 = vadd.f32 0.0036580483, %v492_v49  ;;  %v464_v3 = vadd.f32 0.014752088, %v463_v55 }
  0xac   : > { %v1175_v37 = vadd.f32 %v408_v34, %v363_v32  ;;  %v1177_v38 = vadd.f32 %v427_v35, %v363_v32  ;;  %v454_v1 = vmul.f32 %v453_v51, %v1164_v23  ;;  %v530_v5 = vmul.f32 2.1237322e-06, %v1206_v58 }
  0xad   : > { %v570_v6 = vmul.f32 2.1237322e-06, %v1208_v59  ;;  %v494_v9 = vmul.f32 %v493_v62, %v1166_v26  ;;  %v465_v16 = vmul.f32 %v464_v3, %v1164_v23 }
  0xae   : > { %v1187_v43 = vmul.f32 0.70710677, %v1175_v37  ;;  %v1190_v45 = vmul.f32 0.70710677, %v1177_v38  ;;  %v455_v13 = vadd.f32 0.05243302, %v454_v1 }
  0xaf   : > { %v531_v27 = vadd.f32 0.00028619796, %v530_v5  ;;  %v571_v28 = vadd.f32 0.00028619796, %v570_v6  ;;  %v1243_v42 = vadd.f32 0.05243302, %v494_v9 }
  0xb0   : > { %v608_v48 = vmul.f32 %v1187_v43, %v1187_v43  ;;  %v648_v50 = vmul.f32 %v1190_v45, %v1190_v45  ;;  %v456_v41 = vmul.f32 %v455_v13, %v1164_v23 }
  0xb1   : > { %v532_v49 = vmul.f32 %v531_v27, %v1206_v58 }
  0xb2   : > { %v1201_v52 = vmin.f32 %v608_v48, 16.0  ;;  %v1204_v57 = vmin.f32 %v648_v50, 16.0  ;;  %v457_v62 = vadd.f32 0.18741608, %v456_v41 }
  0xb3   : > { %v410_v53 = vpop.f32.mrf.mxu0  ;;  %v429_v54 = vpop.f32.mrf.mxu1 }
  0xb4   : > { %v610_v60 = vmul.f32 2.1237322e-06, %v1201_v52  ;;  %v1211_v61 = vadd.f32 %v410_v53, %v368_v56  ;;  %v650_v63 = vmul.f32 2.1237322e-06, %v1204_v57  ;;  %v1214_v0 = vadd.f32 %v429_v54, %v368_v56 }
  0xb5   : > { %v621_v12 = vmul.f32 3.8918573e-05, %v1201_v52  ;;  %v661_v25 = vmul.f32 3.8918573e-05, %v1204_v57  ;;  %v466_v53 = vadd.f32 0.112945676, %v465_v16  ;;  %v572_v54 = vmul.f32 %v571_v28, %v1208_v59 }
  0xb6   : > { %v611_v2 = vadd.f32 0.00028619796, %v610_v60  ;;  %v651_v4 = vadd.f32 0.00028619796, %v650_v63  ;;  %v1221_v8 = vmul.f32 0.70710677, %v1211_v61 }
  0xb7   : > { %v1226_v11 = vmul.f32 0.70710677, %v1214_v0  ;;  %v622_v24 = vadd.f32 0.001143296, %v621_v12  ;;  %v662_v36 = vadd.f32 0.001143296, %v661_v25  ;;  %v467_v25 = vmul.f32 %v466_v53, %v1164_v23 }
  0xb8   : > { %v612_v7 = vmul.f32 %v611_v2, %v1201_v52  ;;  %v652_v10 = vmul.f32 %v651_v4, %v1204_v57  ;;  %v688_v15 = vmul.f32 %v1221_v8, %v1221_v8 }
  0xb9   : > { %v728_v22 = vmul.f32 %v1226_v11, %v1226_v11  ;;  %v623_v35 = vmul.f32 %v622_v24, %v1201_v52  ;;  %v663_v48 = vmul.f32 %v662_v36, %v1204_v57 }
  0xba   : > { %v613_v14 = vadd.f32 0.0036580483, %v612_v7  ;;  %v653_v21 = vadd.f32 0.0036580483, %v652_v10  ;;  %v1236_v32 = vmin.f32 %v688_v15, 16.0 }
  0xbb   : > { %v1239_v34 = vmin.f32 %v728_v22, 16.0  ;;  %v624_v51 = vadd.f32 0.014752088, %v623_v35  ;;  %v664_v1 = vadd.f32 0.014752088, %v663_v48 }
  0xbc   : > { %v614_v31 = vmul.f32 %v613_v14, %v1201_v52  ;;  %v654_v33 = vmul.f32 %v653_v21, %v1204_v57  ;;  %v690_v46 = vmul.f32 2.1237322e-06, %v1236_v32  ;;  %v701_v60 = vmul.f32 3.8918573e-05, %v1236_v32 }
  0xbd   : > { %v730_v47 = vmul.f32 2.1237322e-06, %v1239_v34  ;;  %v625_v63 = vmul.f32 %v624_v51, %v1201_v52  ;;  %v741_v2 = vmul.f32 3.8918573e-05, %v1239_v34  ;;  %v533_v7 = vadd.f32 0.0036580483, %v532_v49 }
  0xbe   : > { %v615_v44 = vadd.f32 0.05243302, %v614_v31  ;;  %v655_v50 = vadd.f32 0.05243302, %v654_v33  ;;  %v691_v55 = vadd.f32 0.00028619796, %v690_v46  ;;  %v665_v10 = vmul.f32 %v664_v1, %v1204_v57 }
  0xbf   : > { %v731_v56 = vadd.f32 0.00028619796, %v730_v47  ;;  %v702_v6 = vadd.f32 0.001143296, %v701_v60  ;;  %v626_v9 = vadd.f32 0.112945676, %v625_v63  ;;  %v534_v35 = vmul.f32 %v533_v7, %v1206_v58 }
  0xc0   : > { %v616_v3 = vmul.f32 %v615_v44, %v1201_v52  ;;  %v692_v4 = vmul.f32 %v691_v55, %v1236_v32  ;;  %v742_v12 = vadd.f32 0.001143296, %v741_v2  ;;  %v656_v13 = vmul.f32 %v655_v50, %v1204_v57 }
  0xc1   : > { %v732_v5 = vmul.f32 %v731_v56, %v1239_v34  ;;  %v703_v16 = vmul.f32 %v702_v6, %v1236_v32  ;;  %v627_v21 = vmul.f32 %v626_v9, %v1201_v52  ;;  %v666_v22 = vadd.f32 0.112945676, %v665_v10 }
  0xc2   : > { %v693_v14 = vadd.f32 0.0036580483, %v692_v4  ;;  %v743_v24 = vmul.f32 %v742_v12, %v1239_v34  ;;  %v617_v27 = vadd.f32 0.18741608, %v616_v3  ;;  %v657_v46 = vadd.f32 0.18741608, %v656_v13 }
  0xc3   : > { %v733_v15 = vadd.f32 0.0036580483, %v732_v5  ;;  %v704_v33 = vadd.f32 0.014752088, %v703_v16  ;;  %v628_v36 = vadd.f32 0.4994258, %v627_v21  ;;  %v667_v41 = vmul.f32 %v666_v22, %v1204_v57 }
  0xc4   : > { %v694_v28 = vmul.f32 %v693_v14, %v1236_v32  ;;  %v744_v44 = vadd.f32 0.014752088, %v743_v24  ;;  %v468_v55 = vadd.f32 0.4994258, %v467_v25  ;;  %v618_v56 = vmul.f32 %v617_v27, %v1201_v52 }
  0xc5   : > { %v734_v31 = vmul.f32 %v733_v15, %v1239_v34  ;;  %v705_v49 = vmul.f32 %v704_v33, %v1236_v32  ;;  %v629_v50 = vmul.f32 %v628_v36, %v1201_v52  ;;  %v668_v51 = vadd.f32 0.4994258, %v667_v41 }
  0xc6   : > { %v695_v47 = vadd.f32 0.05243302, %v694_v28  ;;  %v745_v53 = vmul.f32 %v744_v44, %v1239_v34  ;;  %v469_v5 = vmul.f32 %v468_v55, %v1164_v23  ;;  %v1277_v6 = vmul.f32 0.5, %v1175_v37 }
  0xc7   : > { %v735_v48 = vadd.f32 0.05243302, %v734_v31  ;;  %v706_v1 = vadd.f32 0.112945676, %v705_v49  ;;  %v1272_v2 = vadd.f32 1.0, %v629_v50  ;;  %v669_v3 = vmul.f32 %v668_v51, %v1204_v57 }
  0xc8   : > { %v696_v60 = vmul.f32 %v695_v47, %v1236_v32  ;;  %v746_v4 = vadd.f32 0.112945676, %v745_v53  ;;  %v658_v7 = vmul.f32 %v657_v46, %v1204_v57  ;;  %v541_v52 = vmul.f32 3.8918573e-05, %v1206_v58 }
  0xc9   : > { %v736_v63 = vmul.f32 %v735_v48, %v1239_v34  ;;  %v707_v9 = vmul.f32 %v706_v1, %v1236_v32  ;;  %v573_v10 = vadd.f32 0.0036580483, %v572_v54  ;;  %1035 = vrcp.f32 %v1272_v2 }
  0xca   : > { %v697_v12 = vadd.f32 0.18741608, %v696_v60  ;;  %v535_v14 = vadd.f32 0.05243302, %v534_v35  ;;  %v1284_v15 = vmul.f32 0.5, %v1177_v38  ;;  %v1286_v21 = vadd.f32 1.0, %v669_v3 }
  0xcb   : > { %v737_v13 = vadd.f32 0.18741608, %v736_v63  ;;  %v708_v16 = vadd.f32 0.4994258, %v707_v9  ;;  %v1289_v37 = vmul.f32 %v457_v62, %v1164_v23  ;;  %v619_v57 = vadd.f32 1.1283791, %v618_v56 }
  0xcc   : > { %v747_v22 = vmul.f32 %v746_v4, %v1239_v34  ;;  %v1292_v24 = vadd.f32 1.0, %v469_v5  ;;  %v659_v54 = vadd.f32 1.1283791, %v658_v7  ;;  %1037 = vrcp.f32 %v1286_v21 }
  0xcd   : > { %v709_v25 = vmul.f32 %v708_v16, %v1236_v32  ;;  %v542_v27 = vadd.f32 0.001143296, %v541_v52  ;;  %v1297_v38 = vmul.f32 %v573_v10, %v1208_v59  ;;  %v698_v28 = vmul.f32 %v697_v12, %v1236_v32 }
  0xce   : > { %v738_v31 = vmul.f32 %v737_v13, %v1239_v34  ;;  %v748_v23 = vadd.f32 0.4994258, %v747_v22  ;;  %v1302_v62 = vmul.f32 %v535_v14, %v1206_v58  ;;  %v1305_v33 = vmul.f32 0.5, %v1211_v61 }
  0xcf   : > { %v640_v35 = vand.u32 2147483647, %v1272_v2  ;;  %v1308_v36 = vadd.f32 1.0, %v709_v25  ;;  %v1036_v41 = vpop.eup %1035  ;;  %v620_v44 = vmul.f32 %v619_v57, %v1187_v43  ;;  %v642_v46 = vand.u32 2147483648, %v1272_v2 }
  0xd0   : > { %v749_v32 = vmul.f32 %v748_v23, %v1239_v34  ;;  %1039 = vrcp.f32 %v1292_v24  ;;  %v1315_v47 = vmul.f32 %v659_v54, %v1190_v45  ;;  %v632_v48 = vmul.f32 %v1036_v41, %v1272_v2 }
  0xd1   : > { %1041 = vrcp.f32 %v1308_v36  ;;  %v543_v61 = vmul.f32 %v542_v27, %v1206_v58  ;;  %v699_v49 = vadd.f32 1.1283791, %v698_v28  ;;  %v739_v50 = vadd.f32 1.1283791, %v738_v31 }
  0xd2   : > { %vm636_vm2 = vweird.f32 %v1272_v2  ;;  %v1321_v43 = vadd.f32 1.0, %v749_v32  ;;  %v1038_v51 = vpop.eup %1037  ;;  %v633_v53 = vsub.f32 1.0, %v632_v48  ;;  %vm1323_vm3 = vcmp.eq.f32.partialorder %v640_v35, 8.507059e+37 }
  0xd3   : > { %v680_v45 = vand.u32 2147483647, %v1286_v21  ;;  %v682_v55 = vand.u32 2147483648, %v1286_v21  ;;  %vm637_vm4 = vweird.f32 %v1036_v41  ;;  %v643_v56 = vor.u32 1.1754944e-38, %v642_v46 }
  0xd4   : > { %v672_v60 = vmul.f32 %v1038_v51, %v1286_v21  ;;  %vm676_vm5 = vweird.f32 %v1286_v21  ;;  %v634_v63 = vmul.f32 %v1036_v41, %v633_v53  ;;  %1043 = vrcp.f32 %v1321_v43  ;;  %vm638_vm8 = vmor %vm636_vm2, %vm637_vm4 }
  0xd5   : > { %v544_v1 = vadd.f32 0.014752088, %v543_v61  ;;  %v501_v3 = vmul.f32 3.8918573e-05, %v1166_v26  ;;  %v700_v5 = vmul.f32 %v699_v49, %v1221_v8  ;;  %v1337_v7 = vmul.f32 %v739_v50, %v1226_v11 }
  0xd6   : > { %v1333_v4 = vpop.eup %1039  ;;  %v720_v9 = vand.u32 2147483647, %v1308_v36  ;;  %v673_v52 = vsub.f32 1.0, %v672_v60  ;;  %v635_v12 = vadd.f32 %v1036_v41, %v634_v63  ;;  %vm716_vm6 = vweird.f32 %v1308_v36 }
  0xd7   : > { %v1042_v10 = vpop.eup %1041  ;;  %vm1341_vm7 = vcmp.eq.f32.partialorder %v680_v45, 8.507059e+37  ;;  %v683_v14 = vor.u32 1.1754944e-38, %v682_v55  ;;  %v722_v11 = vand.u32 2147483648, %v1308_v36  ;;  %vm677_vm9 = vweird.f32 %v1038_v51 }
  0xd8   : > { %v712_v8 = vmul.f32 %v1042_v10, %v1308_v36  ;;  %v674_v16 = vmul.f32 %v1038_v51, %v673_v52  ;;  %v639_v57 = vsel %vm638_vm8, %v1036_v41, %v635_v12  ;;  %v472_v22 = vmul.f32 %v1333_v4, %v1292_v24  ;;  %vm678_vm11 = vmor %vm676_vm5, %vm677_vm9 }
  0xd9   : > { %v545_v54 = vmul.f32 %v544_v1, %v1206_v58  ;;  %v502_v25 = vadd.f32 0.001143296, %v501_v3  ;;  %v644_v27 = vsel %vm1323_vm3, %v643_v56, %v639_v57  ;;  %vm1355_vm10 = vcmp.eq.f32.partialorder %v720_v9, 8.507059e+37 }
  0xda   : > { %v713_v28 = vsub.f32 1.0, %v712_v8  ;;  %v675_v31 = vadd.f32 %v1038_v51, %v674_v16  ;;  %v1044_v23 = vpop.eup %1043  ;;  %v645_v35 = vmul.f32 %v644_v27, %v620_v44  ;;  %v581_v32 = vmul.f32 3.8918573e-05, %v1208_v59 }
  0xdb   : > { %v546_v41 = vadd.f32 0.112945676, %v545_v54  ;;  %v503_v46 = vmul.f32 %v502_v25, %v1166_v26  ;;  %vm717_vm12 = vweird.f32 %v1042_v10  ;;  %v752_v49 = vmul.f32 %v1044_v23, %v1321_v43 }
  0xdc   : > { %v714_v48 = vmul.f32 %v1042_v10, %v713_v28  ;;  %v679_v61 = vsel %vm678_vm11, %v1038_v51, %v675_v31  ;;  %v723_v50 = vor.u32 1.1754944e-38, %v722_v11  ;;  %v473_v34 = vsub.f32 1.0, %v472_v22  ;;  %vm718_vm13 = vmor %vm716_vm6, %vm717_vm12 }
  0xdd   : > { %v684_v53 = vsel %vm1341_vm7, %v683_v14, %v679_v61  ;;  %v547_v44 = vmul.f32 %v546_v41, %v1206_v58  ;;  %v753_v21 = vsub.f32 1.0, %v752_v49  ;;  %v760_v55 = vand.u32 2147483647, %v1321_v43 }
  0xde   : > { %v715_v45 = vadd.f32 %v1042_v10, %v714_v48  ;;  %v504_v56 = vadd.f32 0.014752088, %v503_v46  ;;  %v995_v60 = vclamps-f32 %v645_v35, 1.0  ;;  %v762_v51 = vand.u32 2147483648, %v1321_v43 }
  0xdf   : > { %v548_v63 = vadd.f32 0.4994258, %v547_v44  ;;  %v582_v1 = vadd.f32 0.001143296, %v581_v32  ;;  %v685_v9 = vmul.f32 %v684_v53, %v1315_v47  ;;  %v754_v52 = vmul.f32 %v1044_v23, %v753_v21 }
  0xe0   : > { %v719_v3 = vsel %vm718_vm13, %v1042_v10, %v715_v45  ;;  %vm757_vm14 = vweird.f32 %v1044_v23  ;;  %vm756_vm15 = vweird.f32 %v1321_v43  ;;  %v474_v13 = vmul.f32 %v1333_v4, %v473_v34 }
  0xe1   : > { %v724_v12 = vsel %vm1355_vm10, %v723_v50, %v719_v3  ;;  %v549_v14 = vmul.f32 %v548_v63, %v1206_v58  ;;  %v755_v8 = vadd.f32 %v1044_v23, %v754_v52  ;;  %vm761_vm0 = vcmp.eq.f32.partialorder %v760_v55, 8.507059e+37  ;;  %vm758_vm1 = vmor %vm756_vm15, %vm757_vm14 }
  0xe2   : > { %v725_v36 = vmul.f32 %v724_v12, %v700_v5  ;;  %v505_v11 = vmul.f32 %v504_v56, %v1166_v26  ;;  %v772_v16 = vadd.f32 1.0, %v995_v60  ;;  %v763_v10 = vor.u32 1.1754944e-38, %v762_v51 }
  0xe3   : > { %v1378_v47 = vadd.f32 1.0, %v549_v14  ;;  %v583_v57 = vmul.f32 %v582_v1, %v1208_v59  ;;  %v996_v54 = vclamps-f32 %v685_v9, 1.0  ;;  %v759_v25 = vsel %vm758_vm1, %v1044_v23, %v755_v8 }
  0xe4   : > { %v997_v22 = vclamps-f32 %v725_v36, 1.0  ;;  %v506_v43 = vadd.f32 0.112945676, %v505_v11  ;;  %v764_v27 = vsel %vm761_vm0, %v763_v10, %v759_v25  ;;  %v475_v28 = vadd.f32 %v1333_v4, %v474_v13  ;;  %v789_v25 = vld [vmem:[%s1451_s4] sm:$0xf] }
  0xe5   : > { %vm477_vm2 = vweird.f32 %v1333_v4  ;;  %1045 = vrcp.f32 %v1378_v47  ;;  %v537_v5 = vadd.f32 0.18741608, %v1302_v62  ;;  %v765_v31 = vmul.f32 %v764_v27, %v1337_v7  ;;  %792 = vperm.xlu2 %1034, %v789_v25  }
  0xe6   : > { %v774_v2 = vadd.f32 1.0, %v997_v22  ;;  %v482_v35 = vand.u32 2147483648, %v1292_v24  ;;  %vm476_vm3 = vweird.f32 %v1292_v24  ;;  %v480_v41 = vand.u32 2147483647, %v1292_v24 }
  0xe7   : > { %v507_v23 = vmul.f32 %v506_v43, %v1166_v26  ;;  %v584_v46 = vadd.f32 0.014752088, %v583_v57  ;;  %v780_v32 = vmul.f32 %v772_v16, %v1277_v6  ;;  %v998_v61 = vclamps-f32 %v765_v31, 1.0  ;;  %vm1392_vm4 = vmor %vm476_vm3, %vm477_vm2 }
  0xe8   : > { %v782_v48 = vmul.f32 %v774_v2, %v1305_v33  ;;  %v773_v49 = vadd.f32 1.0, %v996_v54  ;;  %v459_v7 = vadd.f32 1.1283791, %v1289_v37  ;;  %v479_v50 = vsel %vm1392_vm4, %v1333_v4, %v475_v28 }
  0xe9   : > { %v508_v24 = vadd.f32 0.4994258, %v507_v23  ;;  %v585_v53 = vmul.f32 %v584_v46, %v1208_v59  ;;  %v439_v34 = vmul.f32 0.5, %v1214_v0  ;;  %v775_v44 = vadd.f32 1.0, %v998_v61 }
  0xea   : > { %v787_v6 = vpack.c.bf16 %v782_v48, %v780_v32  ;;  %v483_v33 = vor.u32 1.1754944e-38, %v482_v35  ;;  %v538_v21 = vmul.f32 %v537_v5, %v1206_v58  ;;  %vm481_vm5 = vcmp.eq.f32.partialorder %v480_v41, 8.507059e+37 }
  0xeb   : > { %v1046_v45 = vpop.eup %1045  ;;  %v509_v55 = vmul.f32 %v508_v24, %v1166_v26  ;;  %v586_v56 = vadd.f32 0.112945676, %v585_v53  ;;  %v781_v37 = vmul.f32 %v773_v49, %v1284_v15  ;;  %v783_v60 = vmul.f32 %v775_v44, %v439_v34 }
  0xec   : > { %805 = vmatpush.bf16.msra.mxu2 %v787_v6  ;;  %v484_v4 = vsel %vm481_vm5, %v483_v33, %v479_v50  ;;  %v552_v51 = vmul.f32 %v1046_v45, %v1378_v47  ;;  %v460_v63 = vmul.f32 %v459_v7, %v1155_v19  ;;  %v496_v3 = vmul.f32 %v1243_v42, %v1166_v26 }
  0xed   : > { %v510_v0 = vadd.f32 1.0, %v509_v55  ;;  %v587_v1 = vmul.f32 %v586_v56, %v1208_v59  ;;  %v575_v58 = vadd.f32 0.05243302, %v1297_v38  ;;  %v788_v9 = vpack.c.bf16 %v783_v60, %v781_v37 }
  0xee   : > { %v553_v52 = vsub.f32 1.0, %v552_v51  ;;  %v539_v12 = vadd.f32 1.1283791, %v538_v21  ;;  %v485_v13 = vmul.f32 %v484_v4, %v460_v63  ;;  %v562_v15 = vand.u32 2147483648, %v1378_v47 }
  0xef   : > { %1047 = vrcp.f32 %v510_v0  ;;  %818 = vmatpush.bf16.msra.mxu3 %v788_v9  ;;  %vm557_vm6 = vweird.f32 %v1046_v45  ;;  %v560_v19 = vand.u32 2147483647, %v1378_v47  ;;  %v588_v36 = vadd.f32 0.4994258, %v587_v1 }
  0xf0   : > { %v554_v14 = vmul.f32 %v1046_v45, %v553_v52  ;;  %vm556_vm7 = vweird.f32 %v1378_v47  ;;  %v497_v11 = vadd.f32 0.18741608, %v496_v3  ;;  %v540_v38 = vmul.f32 %v539_v12, %v1180_v39 }
  0xf1   : > { %v589_v42 = vmul.f32 %v588_v36, %v1208_v59  ;;  %v576_v16 = vmul.f32 %v575_v58, %v1208_v59  ;;  %vm558_vm8 = vmor %vm556_vm7, %vm557_vm6  ;;  %v563_v10 = vor.u32 1.1754944e-38, %v562_v15  ;;  %v991_v57 = vclamps-f32 %v485_v13, 1.0 }
  0xf2   : > { %v555_v8 = vadd.f32 %v1046_v45, %v554_v14  ;;  %vm561_vm9 = vcmp.eq.f32.partialorder %v560_v19, 8.507059e+37  ;;  %v498_v39 = vmul.f32 %v497_v11, %v1166_v26  ;;  %v432_v41 = vmul.f32 0.5, %v1150_v17 }
  0xf3   : > { %v590_v54 = vadd.f32 1.0, %v589_v42  ;;  %v577_v5 = vadd.f32 0.18741608, %v576_v16  ;;  %v768_v31 = vadd.f32 1.0, %v991_v57  ;;  %v434_v23 = vmul.f32 0.5, %v1169_v29 }
  0xf4   : > { %v559_v22 = vsel %vm558_vm8, %v1046_v45, %v555_v8  ;;  %v522_v46 = vand.u32 2147483648, %v510_v0  ;;  %v520_v61 = vand.u32 2147483647, %v510_v0  ;;  %v499_v49 = vadd.f32 1.1283791, %v498_v39 }
  0xf5   : > { %v1048_v43 = vpop.eup %1047  ;;  %v564_v27 = vsel %vm561_vm9, %v563_v10, %v559_v22  ;;  %1049 = vrcp.f32 %v590_v54  ;;  %v578_v62 = vmul.f32 %v577_v5, %v1208_v59  ;;  %v776_v50 = vmul.f32 %v768_v31, %v432_v41  ;;  %v784_v59 = vld [vmem:[%s1450_s3] sm:$0x3] }
  0xf6   : > { %v565_v47 = vmul.f32 %v564_v27, %v540_v38  ;;  %v512_v28 = vmul.f32 %v1048_v43, %v510_v0  ;;  %vm517_vm10 = vweird.f32 %v1048_v43  ;;  %vm516_vm11 = vweird.f32 %v510_v0 }
  0xf7   : > { %vm518_vm12 = vmor %vm516_vm11, %vm517_vm10  ;;  %v523_v53 = vor.u32 1.1754944e-38, %v522_v46  ;;  %vm521_vm13 = vcmp.eq.f32.partialorder %v520_v61, 8.507059e+37  ;;  %v500_v29 = vmul.f32 %v499_v49, %v1158_v20  ;;  %v579_v45 = vadd.f32 1.1283791, %v578_v62 }
  0xf8   : > { %v993_v2 = vclamps-f32 %v565_v47, 1.0  ;;  %v513_v35 = vsub.f32 1.0, %v512_v28  ;;  %v602_v21 = vand.u32 2147483648, %v590_v54  ;;  %vm795_vm14 = vcmask 261120  }
  0xf9   : > { %v600_v37 = vand.u32 2147483647, %v590_v54  ;;  %vm596_vm0 = vweird.f32 %v590_v54  ;;  %v580_v4 = vmul.f32 %v579_v45, %v1183_v40  ;;  %v433_v9 = vmul.f32 0.5, %v1152_v18 }
  0xfa   : > { %v770_v32 = vadd.f32 1.0, %v993_v2  ;;  %v514_v48 = vmul.f32 %v1048_v43, %v513_v35  ;;  %v603_v20 = vor.u32 1.1754944e-38, %v602_v21  ;;  %v435_v52 = vmul.f32 0.5, %v1171_v30 }
  0xfb   : > { %v1050_v7 = vpop.eup %1049  ;;  %vm601_vm2 = vcmp.eq.f32.partialorder %v600_v37, 8.507059e+37  ;;  %vm828_vm3 = vcmask 1043456  }
  0xfc   : > { %v778_v24 = vmul.f32 %v770_v32, %v434_v23  ;;  %v515_v26 = vadd.f32 %v1048_v43, %v514_v48  ;;  %v592_v34 = vmul.f32 %v1050_v7, %v590_v54  ;;  %vm597_vm15 = vweird.f32 %v1050_v7 }
  0xfd   : > { %vm598_vm1 = vmor %vm596_vm0, %vm597_vm15 }
  0xfe   : > { %v785_v6 = vpack.c.bf16 %v778_v24, %v776_v50  ;;  %v519_v17 = vsel %vm518_vm12, %v1048_v43, %v515_v26  ;;  %v593_v33 = vsub.f32 1.0, %v592_v34 }
  0xff   : > { %v524_v44 = vsel %vm521_vm13, %v523_v53, %v519_v17 }
 0x100   : > { %806 = vmatpush.bf16.msra.mxu2 %v785_v6  ;;  %v525_v55 = vmul.f32 %v524_v44, %v500_v29  ;;  %v594_v56 = vmul.f32 %v1050_v7, %v593_v33 }
 0x102   : > { %v595_v60 = vadd.f32 %v1050_v7, %v594_v56  ;;  %v992_v51 = vclamps-f32 %v525_v55, 1.0 }
 0x103   : > { %999 = vmatmul.msk.bf16.vlgmr.msra.gmra.mxu2 %vm795_vm14, %v784_v59 }
 0x104   : > { %v599_v63 = vsel %vm598_vm1, %v1050_v7, %v595_v60  ;;  %v769_v58 = vadd.f32 1.0, %v992_v51 }
 0x105   : > { %v604_v0 = vsel %vm601_vm2, %v603_v20, %v599_v63 }
 0x106   : > { %v605_v1 = vmul.f32 %v604_v0, %v580_v4  ;;  %v777_v13 = vmul.f32 %v769_v58, %v433_v9 }
 0x108   : > { %v994_v3 = vclamps-f32 %v605_v1, 1.0 }
 0x10a   : > { %v771_v12 = vadd.f32 1.0, %v994_v3 }
 0x10c   : > { %v779_v15 = vmul.f32 %v771_v12, %v435_v52 }
 0x10e   : > { %v786_v14 = vpack.c.bf16 %v779_v15, %v777_v13 }
 0x110   : > { %819 = vmatpush.bf16.msra.mxu3 %v786_v14 }
 0x113   : > { %1000 = vmatmul.msk.bf16.vlgmr.msra.gmra.mxu3 %vm795_vm14, %v784_v59 }
 0x13f   : > { %v793_v36 = vpop.permute.xlu2 %792 }
 0x186   : > { %v808_v40 = vpop.f32.mrf.mxu2 }
 0x187   : > { %v809_v11 = vadd.f32 %v808_v40, %v793_v36 }
 0x18e   : > { %v810_v19 = vpop.f32.mrf.mxu2 }
 0x196   : > { %v821_v8 = vpop.f32.mrf.mxu3 }
 0x197   : > { %v822_v42 = vadd.f32 %v821_v8, %v793_v36 }
 0x199   : > { %v827_v18 = vrot.slane %v822_v42, 4 }
 0x19b   : > { %v829_v30 = vsel %vm828_vm3, %v809_v11, %v827_v18 }
 0x19c   : > { %831 = vst [vmem:[%s330_s23] sm:$0xff] %v829_v30 }
 0x19e   : > { %v823_v38 = vpop.f32.mrf.mxu3 }
 0x19f PF: > { %s15_s20 = sadd.s32 1, %s1073_s20   ;;  %s1461_s18 = smov %s1069_s19 }
 0x1a0   : > { %p12_p5 = scmp.ge.s32.totalorder %s15_s20, 4   ;;  %s1462_s19 = smov %s1464_s21 }
 0x1a2   :  { %14 = sbr.rel (!%p12_p5) target bundleno = 2 (0x2), region = 79 }

</bundles_post_ra>
